<compile_context>
chip_gen: v6e
topology: v6e:2x2x1
jax: 0.10.0
libtpu: 0.0.40
codegen_flags: <defaults>
</compile_context>

<pallas_src>
import functools

import jax
import jax.numpy as jnp
import numpy as np
from jax.experimental import pallas as pl
from jax.experimental.pallas import tpu as pltpu

NPARAMS = 13                      # [bright, contrast, sat, gray_mean, T_hue_final(9)]
FUSED_MAX_BLOCK_BYTES = 2 << 20   # per-image VMEM block cap for the fused path
TILE_ROWS = 512                   # sublane rows per block in the tiled fallback


def _cdiv(a, b):
    return (a + b - 1) // b


def _round_up(a, m):
    return _cdiv(a, m) * m


# ------------------------------- kernel bodies -------------------------------

def _load_scalars(params_ref, b):
    base = b * NPARAMS
    bf = params_ref[base + 0]
    cf = params_ref[base + 1]
    sf = params_ref[base + 2]
    gm = params_ref[base + 3]
    t = [params_ref[base + 4 + i] for i in range(9)]
    return bf, cf, sf, gm, t


def _brightness(r, g, b, bf):
    return (jnp.clip(r * bf, 0.0, 1.0),
            jnp.clip(g * bf, 0.0, 1.0),
            jnp.clip(b * bf, 0.0, 1.0))


def _contrast_sat_hue(r, g, b, cf, sf, gm, t):
    # contrast: clamp(x * cf + gray_mean * (1 - cf), 0, 1)
    c_off = gm * (1.0 - cf)
    r = jnp.clip(r * cf + c_off, 0.0, 1.0)
    g = jnp.clip(g * cf + c_off, 0.0, 1.0)
    b = jnp.clip(b * cf + c_off, 0.0, 1.0)
    # saturation: clamp(x * sf + gray * (1 - sf), 0, 1)
    gray = 0.299 * r + 0.587 * g + 0.114 * b
    s_off = gray * (1.0 - sf)
    r = jnp.clip(r * sf + s_off, 0.0, 1.0)
    g = jnp.clip(g * sf + s_off, 0.0, 1.0)
    b = jnp.clip(b * sf + s_off, 0.0, 1.0)
    # hue: per-pixel 3x3 rotation on the VPU (no clamp, matches reference)
    out_r = t[0] * r + t[1] * g + t[2] * b
    out_g = t[3] * r + t[4] * g + t[5] * b
    out_b = t[6] * r + t[7] * g + t[8] * b
    return out_r, out_g, out_b


def _fused_kernel(params_ref, x_ref, o_ref, *, inv_hw):
    """Whole image resident in VMEM; contrast gray mean computed in-kernel."""
    b = pl.program_id(0)
    bf, cf, sf, _, t = _load_scalars(params_ref, b)
    r = x_ref[0, :, :].astype(jnp.float32)     # (rows, 128) full-vreg channel planes
    g = x_ref[1, :, :].astype(jnp.float32)
    bl = x_ref[2, :, :].astype(jnp.float32)
    r, g, bl = _brightness(r, g, bl, bf)
    # Padded lanes are zero-filled -> brightness keeps them 0 -> they add 0 to
    # the sum; divide by the true pixel count.
    gray = 0.299 * r + 0.587 * g + 0.114 * bl
    gm = jnp.sum(gray) * inv_hw
    out_r, out_g, out_b = _contrast_sat_hue(r, g, bl, cf, sf, gm, t)
    o_ref[0, :, :] = out_r.astype(o_ref.dtype)
    o_ref[1, :, :] = out_g.astype(o_ref.dtype)
    o_ref[2, :, :] = out_b.astype(o_ref.dtype)


def _tiled_kernel(params_ref, x_ref, o_ref):
    """Spatially tiled fallback; gray mean precomputed in the wrapper (SMEM scalar)."""
    b = pl.program_id(0)
    bf, cf, sf, gm, t = _load_scalars(params_ref, b)
    r = x_ref[0, :, :].astype(jnp.float32)
    g = x_ref[1, :, :].astype(jnp.float32)
    bl = x_ref[2, :, :].astype(jnp.float32)
    r, g, bl = _brightness(r, g, bl, bf)
    out_r, out_g, out_b = _contrast_sat_hue(r, g, bl, cf, sf, gm, t)
    o_ref[0, :, :] = out_r.astype(o_ref.dtype)
    o_ref[1, :, :] = out_g.astype(o_ref.dtype)
    o_ref[2, :, :] = out_b.astype(o_ref.dtype)


# ------------------------------- host wrapper --------------------------------

def _hue_matrices(hue_factor):
    """Per-batch T_final = T_rgb @ T_hue @ T_yiq (tiny 3x3 glue in plain JAX)."""
    B = hue_factor.shape[0]
    scale = 2.0 * jnp.pi * hue_factor
    T_yiq = jnp.array([[0.299, 0.587, 0.114],
                       [0.596, -0.274, -0.321],
                       [0.211, -0.523, 0.311]], dtype=jnp.float32)
    T_rgb = jnp.array([[1.0, 0.956, 0.621],
                       [1.0, -0.272, -0.647],
                       [1.0, -1.107, 1.705]], dtype=jnp.float32)
    c, s = jnp.cos(scale), jnp.sin(scale)
    zeros = jnp.zeros_like(c)
    ones = jnp.ones_like(c)
    T_hue = jnp.stack([ones, zeros, zeros,
                       zeros, c, -s,
                       zeros, s, c], axis=-1).reshape(B, 3, 3)
    return jnp.einsum('ij,bjk,kl->bil', T_rgb, T_hue, T_yiq)


def tensor_color_jitter(img, aug_parameters, *,
                        fused_max_block_bytes=FUSED_MAX_BLOCK_BYTES,
                        tile_rows=TILE_ROWS):
    """img: (B, 3, H, W) float in [0, 1]; aug_parameters: (B, 4) [bright, contrast, sat, hue]."""
    B, C, H, W = img.shape
    assert C == 3, "TensorColorJitter expects RGB images"
    orig_dtype = img.dtype
    # bf16 I/O halves HBM traffic on this memory-bound op; compute stays f32 in-kernel.
    io_dtype = jnp.bfloat16 if img.dtype == jnp.bfloat16 else jnp.float32
    itemsize = jnp.dtype(io_dtype).itemsize
    sub = 16 if io_dtype == jnp.bfloat16 else 8   # sublane-packing multiple

    hw = H * W
    rows = _cdiv(hw, 128)
    x = img.reshape(B, 3, hw).astype(io_dtype)

    bf = aug_parameters[:, 0].astype(jnp.float32)
    cf = aug_parameters[:, 1].astype(jnp.float32)
    sf = aug_parameters[:, 2].astype(jnp.float32)
    t9 = _hue_matrices(aug_parameters[:, 3].astype(jnp.float32)).reshape(B, 9)

    fused = 3 * _round_up(rows, sub) * 128 * itemsize <= fused_max_block_bytes
    # TODO(synk): for B == 1 on v7x, prefer the tiled path (>=2 grid programs) so
    # both TensorCores get work, at the cost of one extra wrapper read for the mean.

    if fused:
        n_tiles = 1
        r_blk = _round_up(rows, sub)
        gm = jnp.zeros((B,), jnp.float32)          # placeholder; computed in-kernel
    else:
        n_tiles = _cdiv(rows, tile_rows)
        r_blk = _round_up(_cdiv(rows, n_tiles), sub)
        # Gray mean of the brightness-adjusted image, precomputed only for images
        # too large to keep VMEM-resident (one extra HBM read in that case).
        bright = jnp.clip(x.astype(jnp.float32) * bf[:, None, None], 0.0, 1.0)
        gray = 0.299 * bright[:, 0] + 0.587 * bright[:, 1] + 0.114 * bright[:, 2]
        gm = jnp.mean(gray, axis=-1)

    pad_rows = r_blk * n_tiles
    padded_hw = pad_rows * 128
    if padded_hw != hw:
        # TODO(synk): mask the ragged tail in-kernel to avoid this pad/slice copy.
        x = jnp.pad(x, ((0, 0), (0, 0), (0, padded_hw - hw)))
    x = x.reshape(B, 3, pad_rows, 128)             # lane- and sublane-dense layout

    params = jnp.concatenate(
        [bf[:, None], cf[:, None], sf[:, None], gm[:, None], t9],
        axis=-1).astype(jnp.float32).reshape(-1)   # (B * NPARAMS,) flat 1-D SMEM array

    cost = pl.CostEstimate(flops=int(60 * B * hw), transcendentals=0,
                           bytes_accessed=int(2 * B * 3 * hw * itemsize))

    if fused:
        kernel = functools.partial(_fused_kernel, inv_hw=1.0 / float(hw))
        grid = (B,)
        in_spec = pl.BlockSpec((None, 3, r_blk, 128), lambda b, p: (b, 0, 0, 0))
        out_spec = pl.BlockSpec((None, 3, r_blk, 128), lambda b, p: (b, 0, 0, 0))
        dims = ("parallel",)
    else:
        kernel = _tiled_kernel
        grid = (B, n_tiles)
        in_spec = pl.BlockSpec((None, 3, r_blk, 128), lambda b, s, p: (b, 0, s, 0))
        out_spec = pl.BlockSpec((None, 3, r_blk, 128), lambda b, s, p: (b, 0, s, 0))
        dims = ("parallel", "parallel")

    out = pl.pallas_call(
        kernel,
        out_shape=jax.ShapeDtypeStruct((B, 3, pad_rows, 128), io_dtype),
        grid_spec=pltpu.PrefetchScalarGridSpec(
            num_scalar_prefetch=1,
            grid=grid,
            in_specs=[in_spec],
            out_specs=out_spec,
        ),
        compiler_params=pltpu.CompilerParams(
            dimension_semantics=dims,
            vmem_limit_bytes=32 * 1024 * 1024),
        cost_estimate=cost,
    )(params, x)

    out = out.reshape(B, 3, padded_hw)
    if padded_hw != hw:
        out = out[:, :, :hw]
    return out.reshape(B, 3, H, W).astype(orig_dtype)


# ------------------------------- validation ----------------------------------

def reference_forward(img, aug_parameters):
    """Pure-JAX mirror of the PyTorch module for validation."""
    bf = aug_parameters[:, 0][:, None, None, None]
    cf = aug_parameters[:, 1][:, None, None, None]
    sf = aug_parameters[:, 2][:, None, None, None]

    # brightness
    img = jnp.clip(img * bf, 0.0, 1.0)
    # contrast
    gray = (0.299 * img[:, 0] + 0.587 * img[:, 1] + 0.114 * img[:, 2])[:, None]
    gm = jnp.mean(gray, axis=(-1, -2), keepdims=True)
    img = jnp.clip(img * cf + gm * (1.0 - cf), 0.0, 1.0)
    # saturation
    gray = (0.299 * img[:, 0] + 0.587 * img[:, 1] + 0.114 * img[:, 2])[:, None]
    img = jnp.clip(img * sf + gray * (1.0 - sf), 0.0, 1.0)
    # hue
    T_final = _hue_matrices(aug_parameters[:, 3])
    img = jnp.einsum('bij,bjhw->bihw', T_final, img)
    return img


if __name__ == "__main__":
    key = jax.random.PRNGKey(0)
    k_img, k_b, k_c, k_s, k_h = jax.random.split(key, 5)

    B, C, H, W = 2, 3, 16, 16
    img = jax.random.uniform(k_img, (B, C, H, W), dtype=jnp.float32)

    # Deterministic "sampled" augmentation parameters, matching the module's
    # sample_random_numbers ranges for brightness=contrast=saturation=0.4, hue=0.1.
    brightness_factor = jax.random.uniform(k_b, (B,), minval=0.6, maxval=1.4)
    contrast_factor = jax.random.uniform(k_c, (B,), minval=0.6, maxval=1.4)
    saturation_factor = jax.random.uniform(k_s, (B,), minval=0.6, maxval=1.4)
    hue_factor = jax.random.uniform(k_h, (B,), minval=-0.1, maxval=0.1)
    aug_parameters = jnp.stack(
        [brightness_factor, contrast_factor, saturation_factor, hue_factor],
        axis=-1).astype(jnp.float32)

    ref = jax.block_until_ready(reference_forward(img, aug_parameters))

    # Fused (VMEM-resident, single-HBM-pass) path.
    out = jax.block_until_ready(tensor_color_jitter(img, aug_parameters))
    np.testing.assert_allclose(np.asarray(out), np.asarray(ref), rtol=1e-5, atol=1e-5)

    # Tiled fallback path (forced by a zero VMEM budget) — same result.
    out_tiled = jax.block_until_ready(
        tensor_color_jitter(img, aug_parameters, fused_max_block_bytes=0))
    np.testing.assert_allclose(np.asarray(out_tiled), np.asarray(ref), rtol=1e-5, atol=1e-5)

    print("KERNEL_OK")
</pallas_src>

<mosaic_0001>
module attributes {stable_mosaic.version = 11 : i64} {
  func.func @_fused_kernel(%arg0: i32, %arg1: memref<26xf32, #tpu.memory_space<smem>>, %arg2: memref<1x3x8x128xf32, #tpu.memory_space<vmem>>, %arg3: memref<1x3x8x128xf32, #tpu.memory_space<vmem>>) attributes {dimension_semantics = [#tpu.dimension_semantics<parallel>], iteration_bounds = array<i64: 2>, scalar_prefetch = 1 : i64, scratch_operands = 0 : i64, tpu.core_type = #tpu.core_type<tc>, window_params = [{transform_indices = @transform_0, window_bounds = array<i64: 1, 3, 8, 128>}, {transform_indices = @transform_1, window_bounds = array<i64: 1, 3, 8, 128>}]} {
    %c13_i32 = arith.constant 13 : i32
    %0 = arith.muli %arg0, %c13_i32 : i32
    %c0_i32 = arith.constant 0 : i32
    %1 = arith.addi %0, %c0_i32 : i32
    %2 = arith.index_cast %1 : i32 to index
    %3 = memref.load %arg1[%2] : memref<26xf32, #tpu.memory_space<smem>>
    %c1_i32 = arith.constant 1 : i32
    %4 = arith.addi %0, %c1_i32 : i32
    %5 = arith.index_cast %4 : i32 to index
    %6 = memref.load %arg1[%5] : memref<26xf32, #tpu.memory_space<smem>>
    %c2_i32 = arith.constant 2 : i32
    %7 = arith.addi %0, %c2_i32 : i32
    %8 = arith.index_cast %7 : i32 to index
    %9 = memref.load %arg1[%8] : memref<26xf32, #tpu.memory_space<smem>>
    %c4_i32 = arith.constant 4 : i32
    %10 = arith.addi %0, %c4_i32 : i32
    %c0_i32_0 = arith.constant 0 : i32
    %11 = arith.addi %10, %c0_i32_0 : i32
    %12 = arith.index_cast %11 : i32 to index
    %13 = memref.load %arg1[%12] : memref<26xf32, #tpu.memory_space<smem>>
    %c4_i32_1 = arith.constant 4 : i32
    %14 = arith.addi %0, %c4_i32_1 : i32
    %c1_i32_2 = arith.constant 1 : i32
    %15 = arith.addi %14, %c1_i32_2 : i32
    %16 = arith.index_cast %15 : i32 to index
    %17 = memref.load %arg1[%16] : memref<26xf32, #tpu.memory_space<smem>>
    %c4_i32_3 = arith.constant 4 : i32
    %18 = arith.addi %0, %c4_i32_3 : i32
    %c2_i32_4 = arith.constant 2 : i32
    %19 = arith.addi %18, %c2_i32_4 : i32
    %20 = arith.index_cast %19 : i32 to index
    %21 = memref.load %arg1[%20] : memref<26xf32, #tpu.memory_space<smem>>
    %c4_i32_5 = arith.constant 4 : i32
    %22 = arith.addi %0, %c4_i32_5 : i32
    %c3_i32 = arith.constant 3 : i32
    %23 = arith.addi %22, %c3_i32 : i32
    %24 = arith.index_cast %23 : i32 to index
    %25 = memref.load %arg1[%24] : memref<26xf32, #tpu.memory_space<smem>>
    %c4_i32_6 = arith.constant 4 : i32
    %26 = arith.addi %0, %c4_i32_6 : i32
    %c4_i32_7 = arith.constant 4 : i32
    %27 = arith.addi %26, %c4_i32_7 : i32
    %28 = arith.index_cast %27 : i32 to index
    %29 = memref.load %arg1[%28] : memref<26xf32, #tpu.memory_space<smem>>
    %c4_i32_8 = arith.constant 4 : i32
    %30 = arith.addi %0, %c4_i32_8 : i32
    %c5_i32 = arith.constant 5 : i32
    %31 = arith.addi %30, %c5_i32 : i32
    %32 = arith.index_cast %31 : i32 to index
    %33 = memref.load %arg1[%32] : memref<26xf32, #tpu.memory_space<smem>>
    %c4_i32_9 = arith.constant 4 : i32
    %34 = arith.addi %0, %c4_i32_9 : i32
    %c6_i32 = arith.constant 6 : i32
    %35 = arith.addi %34, %c6_i32 : i32
    %36 = arith.index_cast %35 : i32 to index
    %37 = memref.load %arg1[%36] : memref<26xf32, #tpu.memory_space<smem>>
    %c4_i32_10 = arith.constant 4 : i32
    %38 = arith.addi %0, %c4_i32_10 : i32
    %c7_i32 = arith.constant 7 : i32
    %39 = arith.addi %38, %c7_i32 : i32
    %40 = arith.index_cast %39 : i32 to index
    %41 = memref.load %arg1[%40] : memref<26xf32, #tpu.memory_space<smem>>
    %c4_i32_11 = arith.constant 4 : i32
    %42 = arith.addi %0, %c4_i32_11 : i32
    %c8_i32 = arith.constant 8 : i32
    %43 = arith.addi %42, %c8_i32 : i32
    %44 = arith.index_cast %43 : i32 to index
    %45 = memref.load %arg1[%44] : memref<26xf32, #tpu.memory_space<smem>>
    %c0 = arith.constant 0 : index
    %c0_12 = arith.constant 0 : index
    %c0_13 = arith.constant 0 : index
    %c0_14 = arith.constant 0 : index
    %46 = vector.load %arg2[%c0, %c0_12, %c0_13, %c0_14] : memref<1x3x8x128xf32, #tpu.memory_space<vmem>>, vector<1x1x8x128xf32>
    %47 = vector.shape_cast %46 : vector<1x1x8x128xf32> to vector<8x128xf32>
    %c0_15 = arith.constant 0 : index
    %c1 = arith.constant 1 : index
    %c0_16 = arith.constant 0 : index
    %c0_17 = arith.constant 0 : index
    %48 = vector.load %arg2[%c0_15, %c1, %c0_16, %c0_17] : memref<1x3x8x128xf32, #tpu.memory_space<vmem>>, vector<1x1x8x128xf32>
    %49 = vector.shape_cast %48 : vector<1x1x8x128xf32> to vector<8x128xf32>
    %c0_18 = arith.constant 0 : index
    %c2 = arith.constant 2 : index
    %c0_19 = arith.constant 0 : index
    %c0_20 = arith.constant 0 : index
    %50 = vector.load %arg2[%c0_18, %c2, %c0_19, %c0_20] : memref<1x3x8x128xf32, #tpu.memory_space<vmem>>, vector<1x1x8x128xf32>
    %51 = vector.shape_cast %50 : vector<1x1x8x128xf32> to vector<8x128xf32>
    %52 = vector.broadcast %3 : f32 to vector<8x128xf32>
    %53 = arith.mulf %47, %52 : vector<8x128xf32>
    %cst = arith.constant 0.000000e+00 : f32
    %cst_21 = arith.constant 1.000000e+00 : f32
    %54 = vector.broadcast %cst : f32 to vector<8x128xf32>
    %55 = arith.maximumf %54, %53 : vector<8x128xf32>
    %56 = vector.broadcast %cst_21 : f32 to vector<8x128xf32>
    %57 = arith.minimumf %56, %55 : vector<8x128xf32>
    %58 = vector.broadcast %3 : f32 to vector<8x128xf32>
    %59 = arith.mulf %49, %58 : vector<8x128xf32>
    %cst_22 = arith.constant 0.000000e+00 : f32
    %cst_23 = arith.constant 1.000000e+00 : f32
    %60 = vector.broadcast %cst_22 : f32 to vector<8x128xf32>
    %61 = arith.maximumf %60, %59 : vector<8x128xf32>
    %62 = vector.broadcast %cst_23 : f32 to vector<8x128xf32>
    %63 = arith.minimumf %62, %61 : vector<8x128xf32>
    %64 = vector.broadcast %3 : f32 to vector<8x128xf32>
    %65 = arith.mulf %51, %64 : vector<8x128xf32>
    %cst_24 = arith.constant 0.000000e+00 : f32
    %cst_25 = arith.constant 1.000000e+00 : f32
    %66 = vector.broadcast %cst_24 : f32 to vector<8x128xf32>
    %67 = arith.maximumf %66, %65 : vector<8x128xf32>
    %68 = vector.broadcast %cst_25 : f32 to vector<8x128xf32>
    %69 = arith.minimumf %68, %67 : vector<8x128xf32>
    %cst_26 = arith.constant 2.990000e-01 : f32
    %70 = vector.broadcast %cst_26 : f32 to vector<8x128xf32>
    %71 = arith.mulf %70, %57 : vector<8x128xf32>
    %cst_27 = arith.constant 5.870000e-01 : f32
    %72 = vector.broadcast %cst_27 : f32 to vector<8x128xf32>
    %73 = arith.mulf %72, %63 : vector<8x128xf32>
    %74 = arith.addf %71, %73 : vector<8x128xf32>
    %cst_28 = arith.constant 1.140000e-01 : f32
    %75 = vector.broadcast %cst_28 : f32 to vector<8x128xf32>
    %76 = arith.mulf %75, %69 : vector<8x128xf32>
    %77 = arith.addf %74, %76 : vector<8x128xf32>
    %78 = vector.shape_cast %77 : vector<8x128xf32> to vector<1x8x128xf32>
    %cst_29 = arith.constant dense<0.000000e+00> : vector<1xf32>
    %79 = vector.multi_reduction <add>, %78, %cst_29 [1, 2] : vector<1x8x128xf32> to vector<1xf32>
    %80 = vector.shape_cast %79 : vector<1xf32> to vector<1x1x1xf32>
    %81 = vector.extract %80[0, 0, 0] : f32 from vector<1x1x1xf32>
    %cst_30 = arith.constant 3.906250e-03 : f32
    %82 = arith.mulf %81, %cst_30 : f32
    %cst_31 = arith.constant 1.000000e+00 : f32
    %83 = arith.subf %cst_31, %6 : f32
    %84 = arith.mulf %82, %83 : f32
    %85 = vector.broadcast %6 : f32 to vector<8x128xf32>
    %86 = arith.mulf %57, %85 : vector<8x128xf32>
    %87 = vector.broadcast %84 : f32 to vector<8x128xf32>
    %88 = arith.addf %86, %87 : vector<8x128xf32>
    %cst_32 = arith.constant 0.000000e+00 : f32
    %cst_33 = arith.constant 1.000000e+00 : f32
    %89 = vector.broadcast %cst_32 : f32 to vector<8x128xf32>
    %90 = arith.maximumf %89, %88 : vector<8x128xf32>
    %91 = vector.broadcast %cst_33 : f32 to vector<8x128xf32>
    %92 = arith.minimumf %91, %90 : vector<8x128xf32>
    %93 = vector.broadcast %6 : f32 to vector<8x128xf32>
    %94 = arith.mulf %63, %93 : vector<8x128xf32>
    %95 = vector.broadcast %84 : f32 to vector<8x128xf32>
    %96 = arith.addf %94, %95 : vector<8x128xf32>
    %cst_34 = arith.constant 0.000000e+00 : f32
    %cst_35 = arith.constant 1.000000e+00 : f32
    %97 = vector.broadcast %cst_34 : f32 to vector<8x128xf32>
    %98 = arith.maximumf %97, %96 : vector<8x128xf32>
    %99 = vector.broadcast %cst_35 : f32 to vector<8x128xf32>
    %100 = arith.minimumf %99, %98 : vector<8x128xf32>
    %101 = vector.broadcast %6 : f32 to vector<8x128xf32>
    %102 = arith.mulf %69, %101 : vector<8x128xf32>
    %103 = vector.broadcast %84 : f32 to vector<8x128xf32>
    %104 = arith.addf %102, %103 : vector<8x128xf32>
    %cst_36 = arith.constant 0.000000e+00 : f32
    %cst_37 = arith.constant 1.000000e+00 : f32
    %105 = vector.broadcast %cst_36 : f32 to vector<8x128xf32>
    %106 = arith.maximumf %105, %104 : vector<8x128xf32>
    %107 = vector.broadcast %cst_37 : f32 to vector<8x128xf32>
    %108 = arith.minimumf %107, %106 : vector<8x128xf32>
    %cst_38 = arith.constant 2.990000e-01 : f32
    %109 = vector.broadcast %cst_38 : f32 to vector<8x128xf32>
    %110 = arith.mulf %109, %92 : vector<8x128xf32>
    %cst_39 = arith.constant 5.870000e-01 : f32
    %111 = vector.broadcast %cst_39 : f32 to vector<8x128xf32>
    %112 = arith.mulf %111, %100 : vector<8x128xf32>
    %113 = arith.addf %110, %112 : vector<8x128xf32>
    %cst_40 = arith.constant 1.140000e-01 : f32
    %114 = vector.broadcast %cst_40 : f32 to vector<8x128xf32>
    %115 = arith.mulf %114, %108 : vector<8x128xf32>
    %116 = arith.addf %113, %115 : vector<8x128xf32>
    %cst_41 = arith.constant 1.000000e+00 : f32
    %117 = arith.subf %cst_41, %9 : f32
    %118 = vector.broadcast %117 : f32 to vector<8x128xf32>
    %119 = arith.mulf %116, %118 : vector<8x128xf32>
    %120 = vector.broadcast %9 : f32 to vector<8x128xf32>
    %121 = arith.mulf %92, %120 : vector<8x128xf32>
    %122 = arith.addf %121, %119 : vector<8x128xf32>
    %cst_42 = arith.constant 0.000000e+00 : f32
    %cst_43 = arith.constant 1.000000e+00 : f32
    %123 = vector.broadcast %cst_42 : f32 to vector<8x128xf32>
    %124 = arith.maximumf %123, %122 : vector<8x128xf32>
    %125 = vector.broadcast %cst_43 : f32 to vector<8x128xf32>
    %126 = arith.minimumf %125, %124 : vector<8x128xf32>
    %127 = vector.broadcast %9 : f32 to vector<8x128xf32>
    %128 = arith.mulf %100, %127 : vector<8x128xf32>
    %129 = arith.addf %128, %119 : vector<8x128xf32>
    %cst_44 = arith.constant 0.000000e+00 : f32
    %cst_45 = arith.constant 1.000000e+00 : f32
    %130 = vector.broadcast %cst_44 : f32 to vector<8x128xf32>
    %131 = arith.maximumf %130, %129 : vector<8x128xf32>
    %132 = vector.broadcast %cst_45 : f32 to vector<8x128xf32>
    %133 = arith.minimumf %132, %131 : vector<8x128xf32>
    %134 = vector.broadcast %9 : f32 to vector<8x128xf32>
    %135 = arith.mulf %108, %134 : vector<8x128xf32>
    %136 = arith.addf %135, %119 : vector<8x128xf32>
    %cst_46 = arith.constant 0.000000e+00 : f32
    %cst_47 = arith.constant 1.000000e+00 : f32
    %137 = vector.broadcast %cst_46 : f32 to vector<8x128xf32>
    %138 = arith.maximumf %137, %136 : vector<8x128xf32>
    %139 = vector.broadcast %cst_47 : f32 to vector<8x128xf32>
    %140 = arith.minimumf %139, %138 : vector<8x128xf32>
    %141 = vector.broadcast %13 : f32 to vector<8x128xf32>
    %142 = arith.mulf %141, %126 : vector<8x128xf32>
    %143 = vector.broadcast %17 : f32 to vector<8x128xf32>
    %144 = arith.mulf %143, %133 : vector<8x128xf32>
    %145 = arith.addf %142, %144 : vector<8x128xf32>
    %146 = vector.broadcast %21 : f32 to vector<8x128xf32>
    %147 = arith.mulf %146, %140 : vector<8x128xf32>
    %148 = arith.addf %145, %147 : vector<8x128xf32>
    %149 = vector.broadcast %25 : f32 to vector<8x128xf32>
    %150 = arith.mulf %149, %126 : vector<8x128xf32>
    %151 = vector.broadcast %29 : f32 to vector<8x128xf32>
    %152 = arith.mulf %151, %133 : vector<8x128xf32>
    %153 = arith.addf %150, %152 : vector<8x128xf32>
    %154 = vector.broadcast %33 : f32 to vector<8x128xf32>
    %155 = arith.mulf %154, %140 : vector<8x128xf32>
    %156 = arith.addf %153, %155 : vector<8x128xf32>
    %157 = vector.broadcast %37 : f32 to vector<8x128xf32>
    %158 = arith.mulf %157, %126 : vector<8x128xf32>
    %159 = vector.broadcast %41 : f32 to vector<8x128xf32>
    %160 = arith.mulf %159, %133 : vector<8x128xf32>
    %161 = arith.addf %158, %160 : vector<8x128xf32>
    %162 = vector.broadcast %45 : f32 to vector<8x128xf32>
    %163 = arith.mulf %162, %140 : vector<8x128xf32>
    %164 = arith.addf %161, %163 : vector<8x128xf32>
    %c0_48 = arith.constant 0 : index
    %c0_49 = arith.constant 0 : index
    %c0_50 = arith.constant 0 : index
    %c0_51 = arith.constant 0 : index
    %165 = vector.load %arg3[%c0_48, %c0_49, %c0_50, %c0_51] : memref<1x3x8x128xf32, #tpu.memory_space<vmem>>, vector<1x1x8x128xf32>
    %166 = vector.shape_cast %165 : vector<1x1x8x128xf32> to vector<8x128xf32>
    %167 = vector.shape_cast %148 : vector<8x128xf32> to vector<1x1x8x128xf32>
    tpu.vector_store %arg3[%c0_48, %c0_49, %c0_50, %c0_51], %167 {strides = array<i32>} : memref<1x3x8x128xf32, #tpu.memory_space<vmem>>, vector<1x1x8x128xf32>,
    %c0_52 = arith.constant 0 : index
    %c1_53 = arith.constant 1 : index
    %c0_54 = arith.constant 0 : index
    %c0_55 = arith.constant 0 : index
    %168 = vector.load %arg3[%c0_52, %c1_53, %c0_54, %c0_55] : memref<1x3x8x128xf32, #tpu.memory_space<vmem>>, vector<1x1x8x128xf32>
    %169 = vector.shape_cast %168 : vector<1x1x8x128xf32> to vector<8x128xf32>
    %170 = vector.shape_cast %156 : vector<8x128xf32> to vector<1x1x8x128xf32>
    tpu.vector_store %arg3[%c0_52, %c1_53, %c0_54, %c0_55], %170 {strides = array<i32>} : memref<1x3x8x128xf32, #tpu.memory_space<vmem>>, vector<1x1x8x128xf32>,
    %c0_56 = arith.constant 0 : index
    %c2_57 = arith.constant 2 : index
    %c0_58 = arith.constant 0 : index
    %c0_59 = arith.constant 0 : index
    %171 = vector.load %arg3[%c0_56, %c2_57, %c0_58, %c0_59] : memref<1x3x8x128xf32, #tpu.memory_space<vmem>>, vector<1x1x8x128xf32>
    %172 = vector.shape_cast %171 : vector<1x1x8x128xf32> to vector<8x128xf32>
    %173 = vector.shape_cast %164 : vector<8x128xf32> to vector<1x1x8x128xf32>
    tpu.vector_store %arg3[%c0_56, %c2_57, %c0_58, %c0_59], %173 {strides = array<i32>} : memref<1x3x8x128xf32, #tpu.memory_space<vmem>>, vector<1x1x8x128xf32>,
    return
  }
  func.func @transform_0(%arg0: i32, %arg1: memref<26xf32, #tpu.memory_space<smem>>) -> (i32, i32, i32, i32) {
    %c0_i32 = arith.constant 0 : i32
    %c0_i32_0 = arith.constant 0 : i32
    %c0_i32_1 = arith.constant 0 : i32
    %c0_i32_2 = arith.constant 0 : i32
    return %arg0, %c0_i32, %c0_i32_0, %c0_i32_1 : i32, i32, i32, i32
  }
  func.func @transform_1(%arg0: i32, %arg1: memref<26xf32, #tpu.memory_space<smem>>) -> (i32, i32, i32, i32) {
    %c0_i32 = arith.constant 0 : i32
    %c0_i32_0 = arith.constant 0 : i32
    %c0_i32_1 = arith.constant 0 : i32
    %c0_i32_2 = arith.constant 0 : i32
    return %arg0, %c0_i32, %c0_i32_0, %c0_i32_1 : i32, i32, i32, i32
  }
}

</mosaic_0001>

<bundles_post_ra>
// kernel: tpu_custom_call.1
= control target key start
LH: loop header
LB: loop body
LE: loop exit
PB: predicated region body
PF: predicated region fallthrough
CT: control target
= control target key end

     0   :  { %s520_s9 = smov [#allocation3]   ;;  %s747_s0 = inlined_call_operand.hbm [shape: f32[26], index: 0, kind: input, shape index: {}]   ;;  %s748_s1 = inlined_call_operand.hbm [shape: f32[2,3,8,128], index: 1, kind: input, shape index: {}]   ;;  %s749_s2 = inlined_call_operand.hbm [shape: f32[2,3,8,128], index: 2, kind: output, shape index: {}]  }
   0x1   :  { %8 = dma.hbm_to_smem %s747_s0, 16, %s520_s9, [#allocation2] }
   0x2   :  { %494 = dma.done.wait [#allocation2], 16 }
   0x3   :  { %495 = vsyncadd [#allocation2], 4294967280 }
   0x4   :  { %10 = sfence }
   0x5   :  { %11 = vsyncpa [#allocation5], 0 }
   0x6   :  { %13 = vsyncpa [#allocation5 + $0x1], 0 }
   0x7   :  { %14 = vsyncpa [#allocation6], 0 }
   0x8   :  { %16 = vsyncpa [#allocation6 + $0x1], 0  ;;  %s545_s12 = smov 0   ;;  %s547_s13 = smov 0  }
   0x9   :  { %s549_s14 = smov 0   ;;  %s551_s15 = smov 0  }
   0xa LB: > { %s566_s0 = sadd.s32 4294967295, %s518_s15   ;;  %s347_s16 = sadd.s32 4294967294, %s518_s15   ;;  %s518_s15 = sphi %s551_s15, %s763_s15   ;;  %s514_s14 = sphi %s549_s14, %s762_s14   ;;  %s510_s13 = sphi %s547_s13, %s761_s13   ;;  %s506_s12 = sphi %s545_s12, %s760_s12  }
   0xb   : > { %s570_s17 = sadd.s32 1, %s518_s15   ;;  %s29_s18 = sadd.s32 1, %s514_s14 }
   0xc   : > { %s26_s19 = ssub.s32 %s518_s15, %s570_s17  ;;  %p36_p0 = scmp.ne.s32.totalorder %s514_s14, %s510_s13 }
   0xd   : > { %p27_p1 = scmp.eq.s32.totalorder %s26_s19, 0  ;;  %p37_p2 = scmp.eq.s32.totalorder %s518_s15, 0 }
   0xe   : > { %p42_p3 = scmp.ne.s32.totalorder %s510_s13, %s506_s12  ;;  %p43_p4 = scmp.eq.s32.totalorder %s566_s0, 0 }
   0xf   : > { %s582_s20 = scalar_select %p27_p1, %s514_s14, %s29_s18  }
  0x10   : > { %p38_p5 = por %p37_p2, %p36_p0  ;;  %p584_p6 = por %p43_p4, %p42_p3 }
  0x11   : > { %p66_p7 = scmp.eq.s32.totalorder %s566_s0, 1  ;;  %p72_p8 = scmp.eq.s32.totalorder %s347_s16, 1 }
  0x12   : > { %s752_s21 = scalar_select %p584_p6, 1, 0 }
  0x13   : > { %p377_p10 = scmp.lt.s32.totalorder %s518_s15, 2  ;;  %p591_p11 = por %p66_p7, %p36_p0 }
  0x14   : > { %p595_p12 = por %p72_p8, %p42_p3  ;;  %s92_s24 = sand.u32 1, %s514_s14  }
  0x15   : > { %s753_s22 = scalar_select %p591_p11, 1, 0 }
  0x16   : > { %s754_s23 = scalar_select %p595_p12, 1, 0 }
  0x17   : > { %s360_s25 = smul.u32 384, %s518_s15  ;;  %p606_p13 = pnand %p377_p10, %p38_p5 }
  0x18   : > { %s359_s26 = smul.u32 24, %s92_s24  ;;  %s612_s5 = scalar_lea.sflag [#allocation5], %s92_s24 }
  0x19   : > { %s604_s29 = scalar_lea.hbm %s748_s1, %s360_s25  ;;  %p426_p1 = pneg %p606_p13 }
  0x1a   : > { %s96_s3 = scalar_lea.vmem [#allocation4], %s359_s26  ;;  %s424_s6 = scalar_lea.hbm %s604_s29, 384 }
  0x1b   : > { %s103_s4 = sshll.u32 %s96_s3, 4  ;;  %p425_p0 = scmp.ne.s32.totalorder %s604_s29, %s424_s6  ;;  %s610_s4 = int_to_ptr.vmem [resolvable:$true] %s103_s4 }
  0x1c   : > { %s429_s9 = scalar_lea.hbm %s748_s1, 768  ;;  %p430_p4 = scmp.lt.s32.totalorder %s604_s29, %s748_s1 }
  0x1d   : > { %p427_p2 = pnand %p426_p1, %p425_p0  ;;  %p431_p5 = scmp.lt.s32.totalorder %s429_s9, %s424_s6 }
  0x1f   : > { %p428_p3 = pneg %p427_p2  ;;  %p432_p7 = por %p431_p5, %p430_p4 }
  0x21   : > { %p433_p8 = pnand %p432_p7, %p428_p3 }
  0x23   : > { %436 = shalt.err (!%p433_p8)
}
  0x24   : > { %s437_s16 = scalar_lea.vmem %s610_s4, 384  ;;  %s521_s18 = smov [#allocation4]  }
  0x25   : > { %p438_p10 = scmp.ne.s32.totalorder %s610_s4, %s437_s16  ;;  %s442_s19 = sshll.u32 %s521_s18, 4  ;;  %s443_s19 = int_to_ptr.vmem [resolvable:$false] %s442_s19 }
  0x26   : > { %s444_s24 = scalar_lea.vmem %s443_s19, 768  ;;  %p445_p2 = scmp.lt.s32.totalorder %s610_s4, %s443_s19 }
  0x27   : > { %p440_p9 = pnand %p438_p10, %p426_p1  ;;  %p446_p12 = scmp.lt.s32.totalorder %s444_s24, %s437_s16 }
  0x29   : > { %p441_p0 = pneg %p440_p9  ;;  %p447_p11 = por %p446_p12, %p445_p2 }
  0x2b   : > { %p448_p6 = pnand %p447_p11, %p441_p0 }
  0x2d   : > { %451 = shalt.err (!%p448_p6)
}
  0x2e   : > { %s522_s25 = smov 128   ;;  %s523_s26 = smov 8  }
  0x2f   : > { %372 = dma.hbm_to_vmem [thread:$0]  (!%p606_p13), %s604_s29, 384, %s610_s4, %s612_s5, %s522_s25, %s522_s25, %s523_s26  }
  0x30   : > { %p351_p9 = scmp.ge.s32.totalorder %s518_s15, 1  ;;  %p111_p1 = scmp.lt.s32.totalorder %s518_s15, 3 }
  0x32   : > { %p112_p3 = pnand %p351_p9, %p111_p1 }
  0x33   : > { %s636_s27 = sand.u32 (!%p112_p3), 1, %s510_s13   ;;  %p756_p6 = scmp.ne.s32.totalorder (!%p112_p3), %s752_s21, 0 }
  0x34   : > { %115 = sbr.rel (%p112_p3) target bundleno = 325 (0x145), region = 24  ;;  %s118_s3 = scalar_lea.sflag (!%p112_p3), [#allocation5], %s636_s27 }
  0x35   : > { %s361_s28 = smul.u32 (!%p112_p3), 24, %s636_s27 }
  0x37   : > { %s121_s6 = scalar_lea.vmem (!%p112_p3), [#allocation4], %s361_s28 }
  0x39   : > { %497 = dma.done.wait (%p756_p6), %s118_s3, 384  }
  0x3a   : > { %499 = vsyncadd (%p756_p6), %s118_s3, 4294966912  ;;  %s647_s29 = smul.u32 13, %s566_s0  ;;  %v164_v0 = vld [vmem:[%s121_s6] sm:$0xff]  ;;  %v352_v1 = vld [vmem:[%s121_s6 + $0x8] sm:$0xff]  ;;  %p757_p12 = scmp.ne.s32.totalorder %s753_s22, 0 }
  0x3b   : > { %v353_v2 = vld [vmem:[%s121_s6 + $0x10] sm:$0xff] }
  0x3c   : > { %s141_s30 = sld [smem:[#allocation3 + %s647_s29]]  ;;  %s142_s4 = sadd.s32 1, %s647_s29 }
  0x3d   : > { %s651_s5 = sld [smem:[#allocation3 + %s142_s4]]  ;;  %s144_s21 = sadd.s32 2, %s647_s29 }
  0x3e   : > { %s656_s10 = sld [smem:[#allocation3 + %s144_s21]]  ;;  %s146_s16 = sadd.s32 4, %s647_s29 }
  0x3f   : > { %s148_s18 = sadd.s32 5, %s647_s29  ;;  %s150_s19 = sadd.s32 6, %s647_s29 }
  0x40   : > { %s661_s24 = sld [smem:[#allocation3 + %s146_s16]]  ;;  %s152_s26 = sadd.s32 7, %s647_s29 }
  0x41   : > { %s663_s25 = sld [smem:[#allocation3 + %s148_s18]]  ;;  %s154_s6 = sadd.s32 8, %s647_s29 }
  0x42   : > { %v169_v3 = vstv %s141_s30  ;;  %s666_s3 = sld [smem:[#allocation3 + %s150_s19]]  ;;  %s156_s30 = sadd.s32 9, %s647_s29 }
  0x43   : > { %v170_v4 = vmul.f32 %v169_v3, %v164_v0  ;;  %v173_v5 = vmul.f32 %v352_v1, %v169_v3  ;;  %v176_v6 = vmul.f32 %v353_v2, %v169_v3  ;;  %v196_v10 = vstv %s651_s5  ;;  %s194_s7 = ssub.f32 1.0, %s651_s5  ;;  %s158_s21 = sadd.s32 10, %s647_s29 }
  0x44   : > { %v218_v39 = vstv %s656_s10  ;;  %s215_s4 = ssub.f32 1.0, %s656_s10  ;;  %s139_s19 = scalar_lea.vmem [#allocation7], %s361_s28 }
  0x45   : > { %v171_v7 = vmax.f32 %v170_v4, 0.0  ;;  %v174_v8 = vmax.f32 %v173_v5, 0.0  ;;  %v177_v9 = vmax.f32 %v176_v6, 0.0  ;;  %s672_s5 = sld [smem:[#allocation3 + %s152_s26]] }
  0x46   : > { %s681_s16 = sld [smem:[#allocation3 + %s158_s21]]  ;;  %v216_v45 = vstv %s215_s4  ;;  %v231_v53 = vstv %s661_s24  ;;  %s274_s24 = sshll.u32 %s139_s19, 4  ;;  %s704_s24 = int_to_ptr.vmem [resolvable:$true] %s274_s24 }
  0x47   : > { %v172_v11 = vmin.f32 %v171_v7, 1.0  ;;  %v175_v12 = vmin.f32 %v174_v8, 1.0  ;;  %v178_v13 = vmin.f32 %v177_v9, 1.0  ;;  %v233_v54 = vstv %s663_s25  ;;  %s452_s28 = scalar_lea.vmem %s704_s24, 384 }
  0x48   : > { %v236_v58 = vstv %s666_s3  ;;  %p453_p11 = scmp.ne.s32.totalorder %s704_s24, %s452_s28 }
  0x49   : > { %v179_v14 = vmul.f32 0.299, %v172_v11  ;;  %v180_v15 = vmul.f32 0.587, %v175_v12  ;;  %v182_v16 = vmul.f32 0.114, %v178_v13  ;;  %v206_v17 = vmul.f32 %v196_v10, %v178_v13 }
  0x4a   : > { %v197_v27 = vmul.f32 %v196_v10, %v172_v11  ;;  %v202_v28 = vmul.f32 %v196_v10, %v175_v12  ;;  %p454_p13 = pnand %p453_p11, %p757_p12 }
  0x4b   : > { %v181_v18 = vadd.f32 %v180_v15, %v179_v14  ;;  %v239_v59 = vstv %s672_s5 }
  0x4c   : > { %v247_v62 = vstv %s681_s16  ;;  %p455_p4 = pneg %p454_p13 }
  0x4d   : > { %v183_v19 = vadd.f32 %v182_v16, %v181_v18 }
  0x4f   : > { %184 = vadd.xlane.f32.xlu0 %v183_v19 }
  0xd8   : > { %v185_v20 = vpop.xlane.xlu0 %184 }
  0xd9   : > { %v186_v21 = vrot.slane %v185_v20, 4 }
  0xdb   : > { %v187_v22 = vadd.f32 %v186_v21, %v185_v20 }
  0xdd   : > { %v188_v23 = vrot.slane %v187_v22, 2 }
  0xdf   : > { %v189_v24 = vadd.f32 %v188_v23, %v187_v22 }
  0xe1   : > { %v190_v25 = vrot.slane %v189_v24, 1 }
  0xe3   : > { %v191_v26 = vadd.f32 %v190_v25, %v189_v24 }
  0xe5   : > { %362 = vpush %v191_v26 }
 0x116   : > { %s363_s8 = spop %362 }
 0x117   : > { %s193_s9 = smul.f32 0.00390625, %s363_s8  ;;  %s160_s8 = sadd.s32 11, %s647_s29 }
 0x118   : > { %s683_s10 = sld [smem:[#allocation3 + %s160_s8]] }
 0x119   : > { %s195_s11 = smul.f32 %s194_s7, %s193_s9  ;;  %s675_s7 = sld [smem:[#allocation3 + %s154_s6]] }
 0x11a   : > { %s678_s9 = sld [smem:[#allocation3 + %s156_s30]]  ;;  %s524_s6 = smov [#allocation7]  }
 0x11b   : > { %v198_v29 = vstv %s195_s11  ;;  %s162_s11 = sadd.s32 12, %s647_s29  ;;  %s364_s29 = smul.u32 384, %s566_s0 }
 0x11c   : > { %v199_v30 = vadd.f32 %v198_v29, %v197_v27  ;;  %v203_v31 = vadd.f32 %v202_v28, %v198_v29  ;;  %v207_v32 = vadd.f32 %v206_v17, %v198_v29  ;;  %s685_s18 = sld [smem:[#allocation3 + %s162_s11]]  ;;  %s261_s0 = scalar_lea.sflag [#allocation6], %s636_s27 }
 0x11d   : > { %s702_s3 = scalar_lea.hbm %s749_s2, %s364_s29  ;;  %s456_s30 = sshll.u32 %s524_s6, 4  ;;  %s457_s30 = int_to_ptr.vmem [resolvable:$false] %s456_s30 }
 0x11e   : > { %v200_v33 = vmax.f32 %v199_v30, 0.0  ;;  %v204_v34 = vmax.f32 %v203_v31, 0.0  ;;  %v208_v35 = vmax.f32 %v207_v32, 0.0  ;;  %v249_v2 = vstv %s683_s10  ;;  %s458_s4 = scalar_lea.vmem %s457_s30, 768  ;;  %p459_p5 = scmp.lt.s32.totalorder %s704_s24, %s457_s30 }
 0x11f   : > { %v241_v60 = vstv %s675_s7  ;;  %p460_p7 = scmp.lt.s32.totalorder %s458_s4, %s452_s28 }
 0x120   : > { %v201_v36 = vmin.f32 %v200_v33, 1.0  ;;  %v205_v37 = vmin.f32 %v204_v34, 1.0  ;;  %v209_v38 = vmin.f32 %v208_v35, 1.0  ;;  %v244_v61 = vstv %s678_s9 }
 0x121   : > { %p461_p8 = por %p460_p7, %p459_p5 }
 0x122   : > { %v210_v40 = vmul.f32 0.299, %v201_v36  ;;  %v211_v41 = vmul.f32 0.587, %v205_v37  ;;  %v227_v42 = vmul.f32 %v218_v39, %v209_v38  ;;  %v213_v44 = vmul.f32 0.114, %v209_v38 }
 0x123   : > { %v219_v48 = vmul.f32 %v218_v39, %v201_v36  ;;  %v223_v49 = vmul.f32 %v218_v39, %v205_v37  ;;  %v252_v3 = vstv %s685_s18  ;;  %p462_p10 = pnand %p461_p8, %p455_p4 }
 0x124   : > { %v212_v43 = vadd.f32 %v211_v41, %v210_v40 }
 0x126   : > { %v214_v46 = vadd.f32 %v213_v44, %v212_v43 }
 0x128   : > { %v217_v47 = vmul.f32 %v216_v45, %v214_v46 }
 0x12a   : > { %v220_v50 = vadd.f32 %v219_v48, %v217_v47  ;;  %v224_v51 = vadd.f32 %v223_v49, %v217_v47  ;;  %v228_v52 = vadd.f32 %v227_v42, %v217_v47 }
 0x12c   : > { %v221_v55 = vmax.f32 %v220_v50, 0.0  ;;  %v225_v56 = vmax.f32 %v224_v51, 0.0  ;;  %v229_v57 = vmax.f32 %v228_v52, 0.0 }
 0x12e   : > { %v222_v63 = vmin.f32 %v221_v55, 1.0  ;;  %v226_v0 = vmin.f32 %v225_v56, 1.0  ;;  %v230_v1 = vmin.f32 %v229_v57, 1.0 }
 0x130   : > { %v232_v4 = vmul.f32 %v231_v53, %v222_v63  ;;  %v234_v5 = vmul.f32 %v233_v54, %v226_v0  ;;  %v237_v6 = vmul.f32 %v236_v58, %v230_v1  ;;  %v240_v7 = vmul.f32 %v239_v59, %v222_v63 }
 0x131   : > { %v242_v8 = vmul.f32 %v241_v60, %v226_v0  ;;  %v245_v9 = vmul.f32 %v244_v61, %v230_v1  ;;  %v248_v10 = vmul.f32 %v247_v62, %v222_v63  ;;  %v250_v11 = vmul.f32 %v249_v2, %v226_v0 }
 0x132   : > { %v235_v12 = vadd.f32 %v234_v5, %v232_v4  ;;  %v253_v13 = vmul.f32 %v252_v3, %v230_v1 }
 0x133   : > { %v243_v14 = vadd.f32 %v242_v8, %v240_v7  ;;  %v251_v15 = vadd.f32 %v250_v11, %v248_v10 }
 0x134   : > { %v238_v16 = vadd.f32 %v237_v6, %v235_v12 }
 0x135   : > { %v246_v17 = vadd.f32 %v245_v9, %v243_v14  ;;  %v254_v18 = vadd.f32 %v253_v13, %v251_v15 }
 0x136   : > { %255 = vst [vmem:[%s139_s19] sm:$0xff] %v238_v16 }
 0x137   : > { %354 = vst [vmem:[%s139_s19 + $0x8] sm:$0xff] %v246_v17  ;;  %355 = vst [vmem:[%s139_s19 + $0x10] sm:$0xff] %v254_v18 }
 0x138   : > { %465 = shalt.err (!%p462_p10)
}
 0x139   : > { %s466_s5 = scalar_lea.hbm %s702_s3, 384  ;;  %s470_s8 = scalar_lea.hbm %s749_s2, 768 }
 0x13a   : > { %p467_p0 = scmp.ne.s32.totalorder %s702_s3, %s466_s5  ;;  %p471_p1 = scmp.lt.s32.totalorder %s702_s3, %s749_s2 }
 0x13b   : > { %p472_p3 = scmp.lt.s32.totalorder %s470_s8, %s466_s5 }
 0x13c   : > { %p468_p2 = pnand %p467_p0, %p757_p12 }
 0x13d   : > { %p473_p6 = por %p472_p3, %p471_p1 }
 0x13e   : > { %p469_p9 = pneg %p468_p2 }
 0x140   : > { %p474_p11 = pnand %p473_p6, %p469_p9 }
 0x142   : > { %477 = shalt.err (!%p474_p11)
}
 0x143   : > { %s525_s16 = smov 128   ;;  %s526_s10 = smov 8  }
 0x144   : > { %367 = dma.vmem_to_hbm [thread:$0]  (%p757_p12), %s704_s24, 384, %s702_s3, %s261_s0, %s525_s16, %s525_s16, %s526_s10  }
 0x145 PF: > { %s289_s18 = sand.u32 1, %s506_s12   ;;  %p758_p13 = scmp.ne.s32.totalorder %s754_s23, 0 }
 0x146   : > { %p759_p4 = scmp.ge.s32.totalorder %s518_s15, 2  ;;  %s290_s29 = scalar_lea.sflag [#allocation6], %s289_s18 }
 0x148   : > { %p374_p5 = pnand %p759_p4, %p758_p13 }
 0x14a   : > { %p375_p7 = pneg %p374_p5 }
 0x14c   : > { %501 = dma.done.wait (%p375_p7), %s290_s29, 384  }
 0x14d   : > { %503 = vsyncadd (%p375_p7), %s290_s29, 4294966912  ;;  %p19_p8 = scmp.ge.s32.totalorder %s570_s17, 4   ;;  %s760_s12 = smov %s510_s13 }
 0x14e   : > { %s761_s13 = smov %s514_s14  ;;  %s762_s14 = smov %s582_s20 }
 0x14f   : > { %s763_s15 = smov %s570_s17  ;;  %21 = sbr.rel (!%p19_p8) target bundleno = 10 (0xa), region = 73 }
 0x154   :  { %295 = vsyncpa [#allocation5], 1 }
 0x155   :  { %297 = vsyncpa [#allocation5 + $0x1], 1 }
 0x156   :  { %298 = vsyncpa [#allocation6], 1 }
 0x157   :  { %300 = vsyncpa [#allocation6 + $0x1], 1 }

</bundles_post_ra>
